<compile_context>
chip_gen: v6e
topology: v6e:2x2x1
jax: 0.10.0
libtpu: 0.0.40
codegen_flags: <defaults>
</compile_context>

<pallas_src>
import functools
from collections import OrderedDict

import jax
import jax.numpy as jnp
from jax.experimental import pallas as pl
from jax.experimental.pallas import tpu as pltpu

_LANE = 128
_BLOCK_TARGET_BYTES = 6 * 1024 * 1024   # combined per-block input bytes (~2 MiB / input)
_VMEM_LIMIT_BYTES = 48 * 1024 * 1024    # <= v7x 64 MiB physical; roomy on v5e/v6e (128 MiB)
_SMALL_FUSED_BYTES = 4 * 1024 * 1024    # below this, fuse the whole pyramid into one launch


def _round_up(x, m):
    return ((x + m - 1) // m) * m


def _pad_last_to_lanes(x):
    """Zero-pad the last axis of `x` to a multiple of 128 lanes (no-op if aligned)."""
    n = x.shape[-1]
    n_pad = _round_up(n, _LANE)
    if n_pad == n:
        return x
    pad = [(0, 0)] * (x.ndim - 1) + [(0, n_pad - n)]
    return jnp.pad(x, pad)


# ----------------------------------------------------------------------------
# Shared in-kernel compute: f32 partial sums for one pyramid level.
#   tar, wsrc : any-layout blocks (fully summed) of the same shape.
#   flow      : block whose LAST axis is the flattened (H, W) plane, zero
#               padded to a multiple of 128 lanes.
# Returns (sse, dx2, dy2) f32 scalar partial sums over this block.
# ----------------------------------------------------------------------------
def _level_partial_sums(tar, wsrc, flow, H, W):
    d = tar.astype(jnp.float32) - wsrc.astype(jnp.float32)
    sse = jnp.sum(d * d)

    f = flow.astype(jnp.float32)
    hw = H * W
    hwp = f.shape[-1]
    axis = f.ndim - 1
    col = jax.lax.broadcasted_iota(jnp.int32, f.shape, axis)

    if W > 1:
        # forward diff along W: dx[i] = f[i+1] - f[i]  (roll on a 128-multiple lane axis)
        dx = pltpu.roll(f, hwp - 1, axis=axis) - f
        mask_x = ((col % W) != (W - 1)) & (col < hw)
        dx = jnp.where(mask_x, dx, 0.0)
        dx2 = jnp.sum(dx * dx)
    else:
        dx2 = jnp.float32(0.0)   # static guard: degenerate W == 1

    if H > 1:
        # forward diff along H: dy[i] = f[i+W] - f[i]
        dy = pltpu.roll(f, hwp - W, axis=axis) - f
        mask_y = col < (H - 1) * W
        dy = jnp.where(mask_y, dy, 0.0)
        dy2 = jnp.sum(dy * dy)
    else:
        dy2 = jnp.float32(0.0)   # static guard: degenerate H == 1

    return sse, dx2, dy2


def _finalize(sse, dx2, dy2, B, C, FC, H, W):
    """Turn partial sums into (sim, reg) means."""
    sim = sse / jnp.float32(B * C * H * W)
    reg = jnp.float32(0.0)
    if W > 1:
        reg = reg + dx2 / jnp.float32(B * FC * H * (W - 1))
    if H > 1:
        reg = reg + dy2 / jnp.float32(B * FC * (H - 1) * W)
    reg = 0.5 * reg
    return sim, reg


# ----------------------------------------------------------------------------
# Path A: the whole pyramid in a SINGLE pallas_call (small/medium pyramids).
# One packed (8,128) f32 output; row l holds [sse_l, dx2_l, dy2_l, 0, ...].
# ----------------------------------------------------------------------------
def _make_fused_kernel(level_hw, out_rows):
    n_lvls = len(level_hw)

    def kernel(*refs):
        out_ref = refs[3 * n_lvls]
        row = jax.lax.broadcasted_iota(jnp.int32, (out_rows, _LANE), 0)
        col = jax.lax.broadcasted_iota(jnp.int32, (out_rows, _LANE), 1)
        acc = jnp.zeros((out_rows, _LANE), jnp.float32)
        for l, (H, W) in enumerate(level_hw):
            sse, dx2, dy2 = _level_partial_sums(
                refs[3 * l][...], refs[3 * l + 1][...], refs[3 * l + 2][...], H, W)
            sel = row == l
            acc = (acc
                   + jnp.where(sel & (col == 0), sse, 0.0)
                   + jnp.where(sel & (col == 1), dx2, 0.0)
                   + jnp.where(sel & (col == 2), dy2, 0.0))
        out_ref[...] = acc   # single lane-dense, unmasked store

    return kernel


def _fused_all_levels_call(tars2, wsrcs2, flows2, level_hw):
    n = len(level_hw)
    out_rows = max(8, _round_up(n, 8))

    inputs, in_specs = [], []
    for t2, s2, f2 in zip(tars2, wsrcs2, flows2):
        for arr in (t2, s2, f2):
            inputs.append(arr)
            # full-array block (no (8,128) divisibility constraint applies)
            in_specs.append(pl.BlockSpec(arr.shape, lambda i, nd=arr.ndim: (0,) * nd))

    bytes_accessed = int(sum(a.size * a.dtype.itemsize for a in inputs)
                         + out_rows * _LANE * 4)
    flops = int(sum(3 * t.size for t in tars2) + sum(10 * f.size for f in flows2))

    packed = pl.pallas_call(
        _make_fused_kernel(tuple(level_hw), out_rows),
        out_shape=jax.ShapeDtypeStruct((out_rows, _LANE), jnp.float32),
        grid_spec=pltpu.PrefetchScalarGridSpec(
            num_scalar_prefetch=0,
            grid=(1,),
            in_specs=in_specs,
            out_specs=pl.BlockSpec((out_rows, _LANE), lambda i: (0, 0)),
        ),
        compiler_params=pltpu.CompilerParams(
            dimension_semantics=("arbitrary",),
            vmem_limit_bytes=_VMEM_LIMIT_BYTES,
        ),
        cost_estimate=pl.CostEstimate(
            flops=flops, transcendentals=0, bytes_accessed=bytes_accessed),
    )(*inputs)
    return packed


# ----------------------------------------------------------------------------
# Path B: one batch-tiled pallas_call per LARGE level.  Each grid block emits
# a packed (1,8,128) partial-sum tile; the tiny final reduce is done by XLA.
# ----------------------------------------------------------------------------
def _tiled_level_kernel(H, W, tar_ref, wsrc_ref, flow_ref, out_ref):
    sse, dx2, dy2 = _level_partial_sums(
        tar_ref[...], wsrc_ref[...], flow_ref[...], H, W)
    row = jax.lax.broadcasted_iota(jnp.int32, (1, 8, _LANE), 1)
    col = jax.lax.broadcasted_iota(jnp.int32, (1, 8, _LANE), 2)
    out_ref[...] = (jnp.where((row == 0) & (col == 0), sse, 0.0)
                    + jnp.where((row == 0) & (col == 1), dx2, 0.0)
                    + jnp.where((row == 0) & (col == 2), dy2, 0.0))


def _pick_grid(batch, per_batch_bytes, target=_BLOCK_TARGET_BYTES):
    """Grid size G dividing `batch`; prefer G>=2 (v7x megacore) with blocks <= target."""
    fallback = None
    for g in range(1, batch + 1):
        if batch % g:
            continue
        if (batch // g) * per_batch_bytes <= target:
            if g >= 2:
                return g
            fallback = g
    # TODO(synk): if a single batch item exceeds the block target, also split
    #             the flattened plane axis (per-plane sub-blocks) instead of
    #             falling back to one-item blocks.
    return fallback if fallback is not None else batch


def _tiled_level_partial_sums(tar, wsrc, flow):
    B, C, H, W = tar.shape
    Bf, FC, Hf, Wf = flow.shape
    assert wsrc.shape == tar.shape and (B, H, W) == (Bf, Hf, Wf)

    # Lane-dense layouts (free, contiguous reshapes); flow plane axis padded to
    # a 128-lane multiple so pltpu.roll acts on aligned widths.
    tar3 = tar.reshape(B, C, H * W)
    wsrc3 = wsrc.reshape(B, C, H * W)
    flow3 = _pad_last_to_lanes(flow.reshape(B, FC, H * W))
    HWp = flow3.shape[-1]

    per_batch_bytes = (2 * C * H * W * tar3.dtype.itemsize
                       + FC * HWp * flow3.dtype.itemsize)
    G = _pick_grid(B, per_batch_bytes)
    PB = B // G

    bytes_accessed = int((tar3.size + wsrc3.size) * tar3.dtype.itemsize
                         + flow3.size * flow3.dtype.itemsize + G * 8 * _LANE * 4)
    flops = int(3 * tar3.size + 10 * flow3.size)

    parts = pl.pallas_call(
        functools.partial(_tiled_level_kernel, H, W),
        out_shape=jax.ShapeDtypeStruct((G, 8, _LANE), jnp.float32),
        grid_spec=pltpu.PrefetchScalarGridSpec(
            num_scalar_prefetch=0,
            grid=(G,),
            in_specs=[
                pl.BlockSpec((PB, C, H * W), lambda g: (g, 0, 0)),
                pl.BlockSpec((PB, C, H * W), lambda g: (g, 0, 0)),
                pl.BlockSpec((PB, FC, HWp), lambda g: (g, 0, 0)),
            ],
            out_specs=pl.BlockSpec((1, 8, _LANE), lambda g: (g, 0, 0)),
        ),
        compiler_params=pltpu.CompilerParams(
            # Per-block outputs -> no cross-iteration state -> safe to shard
            # the grid across TensorCores (v7x megacore).
            dimension_semantics=("parallel",),
            vmem_limit_bytes=_VMEM_LIMIT_BYTES,
        ),
        cost_estimate=pl.CostEstimate(
            flops=flops, transcendentals=0, bytes_accessed=bytes_accessed),
    )(tar3, wsrc3, flow3)

    sse = jnp.sum(parts[:, 0, 0])
    dx2 = jnp.sum(parts[:, 0, 1])
    dy2 = jnp.sum(parts[:, 0, 2])
    return sse, dx2, dy2


# ----------------------------------------------------------------------------
# Multi-level fused sim+reg entry point.
# ----------------------------------------------------------------------------
def multires_sim_reg(tars, warped_srcs, flows, input_dtype=None):
    """Fused MSE-similarity + diffusion-regulariser for a loss pyramid.

    Returns (sims, regs): per-level unweighted f32 scalars
        sim_l = mean((tar_l - warped_src_l)^2)
        reg_l = 0.5 * (mean(dx(flow_l)^2) + mean(dy(flow_l)^2))
    """
    n = len(tars)
    assert len(warped_srcs) == n and len(flows) == n
    if input_dtype is not None:
        # e.g. bf16: halves the HBM read traffic of this memory-bound kernel.
        tars = [t.astype(input_dtype) for t in tars]
        warped_srcs = [s.astype(input_dtype) for s in warped_srcs]
        flows = [f.astype(input_dtype) for f in flows]

    meta = []
    for tar, wsrc, flow in zip(tars, warped_srcs, flows):
        B, C, H, W = tar.shape
        Bf, FC, Hf, Wf = flow.shape
        assert wsrc.shape == tar.shape and (B, H, W) == (Bf, Hf, Wf)
        meta.append((B, C, FC, H, W))

    total_bytes = sum(t.size * t.dtype.itemsize + s.size * s.dtype.itemsize
                      + f.size * f.dtype.itemsize
                      for t, s, f in zip(tars, warped_srcs, flows))

    sims, regs = [], []
    if total_bytes <= _SMALL_FUSED_BYTES:
        # One launch for the whole pyramid: per-level launch overhead dominates
        # at these sizes.  Lane-dense flattened layouts.
        tars2 = [t.reshape(m[0], m[1] * m[3] * m[4]) for t, m in zip(tars, meta)]
        wsrcs2 = [s.reshape(m[0], m[1] * m[3] * m[4]) for s, m in zip(warped_srcs, meta)]
        flows2 = [_pad_last_to_lanes(f.reshape(m[0] * m[2], m[3] * m[4]))
                  for f, m in zip(flows, meta)]
        packed = _fused_all_levels_call(tars2, wsrcs2, flows2,
                                        [(m[3], m[4]) for m in meta])
        for l, (B, C, FC, H, W) in enumerate(meta):
            sim, reg = _finalize(packed[l, 0], packed[l, 1], packed[l, 2],
                                 B, C, FC, H, W)
            sims.append(sim)
            regs.append(reg)
    else:
        # Large levels: one batch-tiled launch per level.
        for (tar, wsrc, flow), (B, C, FC, H, W) in zip(
                zip(tars, warped_srcs, flows), meta):
            sse, dx2, dy2 = _tiled_level_partial_sums(tar, wsrc, flow)
            sim, reg = _finalize(sse, dx2, dy2, B, C, FC, H, W)
            sims.append(sim)
            regs.append(reg)
    return sims, regs


# ----------------------------------------------------------------------------
# MultiResLoss: faithful JAX port of the PyTorch module's forward.
# Accepts either separate per-level sim/reg loss fns (like the PyTorch spec) or
# a fused multi-level fn (tars, warped_srcs, flows) -> (sims, regs).
# ----------------------------------------------------------------------------
class MultiResLoss:
    def __init__(self, sim_loss_fn, sim_loss_name, reg_loss_fn, reg_loss_name,
                 reg_weight=0.0, ml_lvls=1, ml_weights=None, multires_fn=None):
        self.sim_loss_fn = sim_loss_fn
        self.sim_loss_name = sim_loss_name
        self.reg_loss_fn = reg_loss_fn
        self.reg_loss_name = reg_loss_name
        self.reg_weight = reg_weight
        self.ml_lvls = ml_lvls
        if ml_weights is None:
            ml_weights = (1.0,) * ml_lvls
        self.ml_weights = ml_weights
        assert len(self.ml_weights) == self.ml_lvls
        self.multires_fn = multires_fn

    def __call__(self, tars, warped_srcs, flows):
        assert len(tars) == self.ml_lvls
        assert len(warped_srcs) == self.ml_lvls
        assert len(flows) == self.ml_lvls

        if self.multires_fn is not None:
            sims_raw, regs_raw = self.multires_fn(tars, warped_srcs, flows)
        else:
            sims_raw = [self.sim_loss_fn(t, s) for t, s in zip(tars, warped_srcs)]
            regs_raw = [self.reg_loss_fn(f) for f in flows]

        sim_loss, reg_loss, loss = [], [], []
        losses = OrderedDict()
        for lvl, (sim_raw, reg_raw, weight_l) in enumerate(
                zip(sims_raw, regs_raw, self.ml_weights)):
            sim_loss_l = sim_raw * weight_l
            reg_loss_l = reg_raw * self.reg_weight * weight_l
            loss_l = sim_loss_l + reg_loss_l
            sim_loss.append(sim_loss_l)
            reg_loss.append(reg_loss_l)
            loss.append(loss_l)
            if self.ml_lvls > 1:
                losses.update({
                    f'{self.sim_loss_name}_lv{lvl}': sim_loss_l,
                    f'{self.reg_loss_name}_lv{lvl}': reg_loss_l,
                    f'loss_lv{lvl}': loss_l,
                })
        losses.update({
            f'{self.sim_loss_name}': jnp.sum(jnp.stack(sim_loss)),
            f'{self.reg_loss_name}': jnp.sum(jnp.stack(reg_loss)),
            'loss': jnp.sum(jnp.stack(loss)),
        })
        return losses


# ----------------------------------------------------------------------------
if __name__ == "__main__":
    key = jax.random.PRNGKey(0)

    B, C = 2, 1            # images: (B, C, H, W), NCHW
    FC = 2                 # flow channels (2-D displacement field)
    ml_lvls = 3
    ml_weights = (1.0, 0.5, 0.25)
    reg_weight = 0.1
    base_hw = 16

    tars, warped_srcs, flows = [], [], []
    for lvl in range(ml_lvls):
        hw = base_hw // (2 ** lvl)        # 16, 8, 4
        key, k1, k2, k3 = jax.random.split(key, 4)
        tars.append(jax.random.normal(k1, (B, C, hw, hw), dtype=jnp.float32))
        warped_srcs.append(jax.random.normal(k2, (B, C, hw, hw), dtype=jnp.float32))
        flows.append(jax.random.normal(k3, (B, FC, hw, hw), dtype=jnp.float32))

    # Pure-JAX reference.
    def ref_level(tar, wsrc, flow):
        sim = jnp.mean((tar - wsrc) ** 2)
        dx = flow[..., :, 1:] - flow[..., :, :-1]
        dy = flow[..., 1:, :] - flow[..., :-1, :]
        reg = 0.5 * (jnp.mean(dx ** 2) + jnp.mean(dy ** 2))
        return sim, reg

    ref_total = jnp.float32(0.0)
    for lvl in range(ml_lvls):
        s, r = ref_level(tars[lvl], warped_srcs[lvl], flows[lvl])
        ref_total = ref_total + s * ml_weights[lvl] + r * reg_weight * ml_weights[lvl]

    # 1) f32 inputs, single fused multi-level launch.
    loss_fn = MultiResLoss(
        sim_loss_fn=None, sim_loss_name="mse",
        reg_loss_fn=None, reg_loss_name="grad",
        reg_weight=reg_weight, ml_lvls=ml_lvls, ml_weights=ml_weights,
        multires_fn=multires_sim_reg,
    )
    losses = loss_fn(tars, warped_srcs, flows)
    jax.block_until_ready(losses["loss"])
    assert jnp.allclose(losses["loss"], ref_total, rtol=1e-5, atol=1e-5), \
        (losses["loss"], ref_total)

    # 2) bf16-input path (halves HBM read traffic); looser tolerance vs f32 ref.
    loss_fn_bf16 = MultiResLoss(
        sim_loss_fn=None, sim_loss_name="mse",
        reg_loss_fn=None, reg_loss_name="grad",
        reg_weight=reg_weight, ml_lvls=ml_lvls, ml_weights=ml_weights,
        multires_fn=functools.partial(multires_sim_reg, input_dtype=jnp.bfloat16),
    )
    losses_bf16 = loss_fn_bf16(tars, warped_srcs, flows)
    jax.block_until_ready(losses_bf16["loss"])
    assert jnp.allclose(losses_bf16["loss"], ref_total, rtol=5e-2, atol=1e-2), \
        (losses_bf16["loss"], ref_total)

    # 3) Exercise the batch-tiled large-level path once (parallel grid G=2).
    key, k1, k2, k3 = jax.random.split(key, 4)
    Bt, Ht = 8, 32
    tar_t = jax.random.normal(k1, (Bt, C, Ht, Ht), dtype=jnp.float32)
    wsrc_t = jax.random.normal(k2, (Bt, C, Ht, Ht), dtype=jnp.float32)
    flow_t = jax.random.normal(k3, (Bt, FC, Ht, Ht), dtype=jnp.float32)
    sse_t, dx2_t, dy2_t = _tiled_level_partial_sums(tar_t, wsrc_t, flow_t)
    sim_t, reg_t = _finalize(sse_t, dx2_t, dy2_t, Bt, C, FC, Ht, Ht)
    jax.block_until_ready(sim_t)
    s_ref, r_ref = ref_level(tar_t, wsrc_t, flow_t)
    assert jnp.allclose(sim_t, s_ref, rtol=1e-4, atol=1e-5), (sim_t, s_ref)
    assert jnp.allclose(reg_t, r_ref, rtol=1e-4, atol=1e-5), (reg_t, r_ref)

    print("KERNEL_OK")
</pallas_src>

<mosaic_0001>
module attributes {stable_mosaic.version = 11 : i64} {
  func.func @kernel(%arg0: i32, %arg1: memref<2x256xf32, #tpu.memory_space<vmem>>, %arg2: memref<2x256xf32, #tpu.memory_space<vmem>>, %arg3: memref<4x256xf32, #tpu.memory_space<vmem>>, %arg4: memref<2x64xf32, #tpu.memory_space<vmem>>, %arg5: memref<2x64xf32, #tpu.memory_space<vmem>>, %arg6: memref<4x128xf32, #tpu.memory_space<vmem>>, %arg7: memref<2x16xf32, #tpu.memory_space<vmem>>, %arg8: memref<2x16xf32, #tpu.memory_space<vmem>>, %arg9: memref<4x128xf32, #tpu.memory_space<vmem>>, %arg10: memref<8x128xf32, #tpu.memory_space<vmem>>) attributes {dimension_semantics = [#tpu.dimension_semantics<arbitrary>], iteration_bounds = array<i64: 1>, scalar_prefetch = 0 : i64, scratch_operands = 0 : i64, tpu.core_type = #tpu.core_type<tc>, window_params = [{pipeline_mode = #tpu.pipeline_mode<synchronous>, transform_indices = @transform_0, window_bounds = array<i64: 2, 256>}, {pipeline_mode = #tpu.pipeline_mode<synchronous>, transform_indices = @transform_1, window_bounds = array<i64: 2, 256>}, {pipeline_mode = #tpu.pipeline_mode<synchronous>, transform_indices = @transform_2, window_bounds = array<i64: 4, 256>}, {pipeline_mode = #tpu.pipeline_mode<synchronous>, transform_indices = @transform_3, window_bounds = array<i64: 2, 64>}, {pipeline_mode = #tpu.pipeline_mode<synchronous>, transform_indices = @transform_4, window_bounds = array<i64: 2, 64>}, {pipeline_mode = #tpu.pipeline_mode<synchronous>, transform_indices = @transform_5, window_bounds = array<i64: 4, 128>}, {pipeline_mode = #tpu.pipeline_mode<synchronous>, transform_indices = @transform_6, window_bounds = array<i64: 2, 16>}, {pipeline_mode = #tpu.pipeline_mode<synchronous>, transform_indices = @transform_7, window_bounds = array<i64: 2, 16>}, {pipeline_mode = #tpu.pipeline_mode<synchronous>, transform_indices = @transform_8, window_bounds = array<i64: 4, 128>}, {pipeline_mode = #tpu.pipeline_mode<synchronous>, transform_indices = @transform_9, window_bounds = array<i64: 8, 128>}]} {
    %0 = tpu.iota {dimensions = array<i32: 0>} : vector<8x128xi32>
    %1 = tpu.iota {dimensions = array<i32: 1>} : vector<8x128xi32>
    %cst = arith.constant 0.000000e+00 : f32
    %2 = vector.broadcast %cst : f32 to vector<8x128xf32>
    %c0 = arith.constant 0 : index
    %c0_0 = arith.constant 0 : index
    %3 = vector.load %arg1[%c0, %c0_0] : memref<2x256xf32, #tpu.memory_space<vmem>>, vector<2x256xf32>
    %c0_1 = arith.constant 0 : index
    %c0_2 = arith.constant 0 : index
    %4 = vector.load %arg2[%c0_1, %c0_2] : memref<2x256xf32, #tpu.memory_space<vmem>>, vector<2x256xf32>
    %c0_3 = arith.constant 0 : index
    %c0_4 = arith.constant 0 : index
    %5 = vector.load %arg3[%c0_3, %c0_4] : memref<4x256xf32, #tpu.memory_space<vmem>>, vector<4x256xf32>
    %6 = arith.subf %3, %4 : vector<2x256xf32>
    %7 = arith.mulf %6, %6 : vector<2x256xf32>
    %8 = vector.shape_cast %7 : vector<2x256xf32> to vector<1x2x256xf32>
    %cst_5 = arith.constant dense<0.000000e+00> : vector<1xf32>
    %9 = vector.multi_reduction <add>, %8, %cst_5 [1, 2] : vector<1x2x256xf32> to vector<1xf32>
    %10 = vector.shape_cast %9 : vector<1xf32> to vector<1x1x1xf32>
    %11 = vector.extract %10[0, 0, 0] : f32 from vector<1x1x1xf32>
    %12 = tpu.iota {dimensions = array<i32: 1>} : vector<4x256xi32>
    %c255_i32 = arith.constant 255 : i32
    %13 = tpu.dynamic_rotate %5 by %c255_i32 dim 1 : vector<4x256xf32>, i32 -> vector<4x256xf32>
    %14 = arith.subf %13, %5 : vector<4x256xf32>
    %c16_i32 = arith.constant 16 : i32
    %c0_i32 = arith.constant 0 : i32
    %15 = arith.cmpi eq, %c16_i32, %c0_i32 : i32
    %c1_i32 = arith.constant 1 : i32
    %16 = arith.select %15, %c1_i32, %c16_i32 : i32
    %17 = vector.broadcast %16 : i32 to vector<4x256xi32>
    %18 = arith.remsi %12, %17 : vector<4x256xi32>
    %c0_i32_6 = arith.constant 0 : i32
    %19 = vector.broadcast %c0_i32_6 : i32 to vector<4x256xi32>
    %20 = arith.cmpi ne, %18, %19 : vector<4x256xi32>
    %c0_i32_7 = arith.constant 0 : i32
    %21 = vector.broadcast %c0_i32_7 : i32 to vector<4x256xi32>
    %22 = arith.cmpi slt, %18, %21 : vector<4x256xi32>
    %c0_i32_8 = arith.constant 0 : i32
    %23 = arith.cmpi slt, %16, %c0_i32_8 : i32
    %24 = vector.broadcast %23 : i1 to vector<4x256xi1>
    %25 = vector.broadcast %24 : vector<4x256xi1> to vector<4x256xi1>
    %26 = arith.xori %22, %25 : vector<4x256xi1>
    %27 = arith.andi %26, %20 : vector<4x256xi1>
    %28 = vector.broadcast %16 : i32 to vector<4x256xi32>
    %29 = arith.addi %18, %28 : vector<4x256xi32>
    %30 = arith.select %27, %29, %18 : vector<4x256xi1>, vector<4x256xi32>
    %c15_i32 = arith.constant 15 : i32
    %31 = vector.broadcast %c15_i32 : i32 to vector<4x256xi32>
    %32 = arith.cmpi ne, %30, %31 : vector<4x256xi32>
    %c256_i32 = arith.constant 256 : i32
    %33 = vector.broadcast %c256_i32 : i32 to vector<4x256xi32>
    %34 = arith.cmpi slt, %12, %33 : vector<4x256xi32>
    %35 = arith.andi %32, %34 : vector<4x256xi1>
    %cst_9 = arith.constant 0.000000e+00 : f32
    %36 = vector.broadcast %cst_9 : f32 to vector<4x256xf32>
    %37 = arith.select %35, %14, %36 : vector<4x256xi1>, vector<4x256xf32>
    %38 = arith.mulf %37, %37 : vector<4x256xf32>
    %39 = vector.shape_cast %38 : vector<4x256xf32> to vector<1x4x256xf32>
    %cst_10 = arith.constant dense<0.000000e+00> : vector<1xf32>
    %40 = vector.multi_reduction <add>, %39, %cst_10 [1, 2] : vector<1x4x256xf32> to vector<1xf32>
    %41 = vector.shape_cast %40 : vector<1xf32> to vector<1x1x1xf32>
    %42 = vector.extract %41[0, 0, 0] : f32 from vector<1x1x1xf32>
    %c240_i32 = arith.constant 240 : i32
    %43 = tpu.dynamic_rotate %5 by %c240_i32 dim 1 : vector<4x256xf32>, i32 -> vector<4x256xf32>
    %44 = arith.subf %43, %5 : vector<4x256xf32>
    %c240_i32_11 = arith.constant 240 : i32
    %45 = vector.broadcast %c240_i32_11 : i32 to vector<4x256xi32>
    %46 = arith.cmpi slt, %12, %45 : vector<4x256xi32>
    %cst_12 = arith.constant 0.000000e+00 : f32
    %47 = vector.broadcast %cst_12 : f32 to vector<4x256xf32>
    %48 = arith.select %46, %44, %47 : vector<4x256xi1>, vector<4x256xf32>
    %49 = arith.mulf %48, %48 : vector<4x256xf32>
    %50 = vector.shape_cast %49 : vector<4x256xf32> to vector<1x4x256xf32>
    %cst_13 = arith.constant dense<0.000000e+00> : vector<1xf32>
    %51 = vector.multi_reduction <add>, %50, %cst_13 [1, 2] : vector<1x4x256xf32> to vector<1xf32>
    %52 = vector.shape_cast %51 : vector<1xf32> to vector<1x1x1xf32>
    %53 = vector.extract %52[0, 0, 0] : f32 from vector<1x1x1xf32>
    %c0_i32_14 = arith.constant 0 : i32
    %54 = vector.broadcast %c0_i32_14 : i32 to vector<8x128xi32>
    %55 = arith.cmpi eq, %0, %54 : vector<8x128xi32>
    %c0_i32_15 = arith.constant 0 : i32
    %56 = vector.broadcast %c0_i32_15 : i32 to vector<8x128xi32>
    %57 = arith.cmpi eq, %1, %56 : vector<8x128xi32>
    %58 = arith.andi %55, %57 : vector<8x128xi1>
    %cst_16 = arith.constant 0.000000e+00 : f32
    %59 = vector.broadcast %11 : f32 to vector<8x128xf32>
    %60 = vector.broadcast %cst_16 : f32 to vector<8x128xf32>
    %61 = arith.select %58, %59, %60 : vector<8x128xi1>, vector<8x128xf32>
    %62 = arith.addf %2, %61 : vector<8x128xf32>
    %c1_i32_17 = arith.constant 1 : i32
    %63 = vector.broadcast %c1_i32_17 : i32 to vector<8x128xi32>
    %64 = arith.cmpi eq, %1, %63 : vector<8x128xi32>
    %65 = arith.andi %55, %64 : vector<8x128xi1>
    %cst_18 = arith.constant 0.000000e+00 : f32
    %66 = vector.broadcast %42 : f32 to vector<8x128xf32>
    %67 = vector.broadcast %cst_18 : f32 to vector<8x128xf32>
    %68 = arith.select %65, %66, %67 : vector<8x128xi1>, vector<8x128xf32>
    %69 = arith.addf %62, %68 : vector<8x128xf32>
    %c2_i32 = arith.constant 2 : i32
    %70 = vector.broadcast %c2_i32 : i32 to vector<8x128xi32>
    %71 = arith.cmpi eq, %1, %70 : vector<8x128xi32>
    %72 = arith.andi %55, %71 : vector<8x128xi1>
    %cst_19 = arith.constant 0.000000e+00 : f32
    %73 = vector.broadcast %53 : f32 to vector<8x128xf32>
    %74 = vector.broadcast %cst_19 : f32 to vector<8x128xf32>
    %75 = arith.select %72, %73, %74 : vector<8x128xi1>, vector<8x128xf32>
    %76 = arith.addf %69, %75 : vector<8x128xf32>
    %c0_20 = arith.constant 0 : index
    %c0_21 = arith.constant 0 : index
    %77 = vector.load %arg4[%c0_20, %c0_21] : memref<2x64xf32, #tpu.memory_space<vmem>>, vector<2x64xf32>
    %c0_22 = arith.constant 0 : index
    %c0_23 = arith.constant 0 : index
    %78 = vector.load %arg5[%c0_22, %c0_23] : memref<2x64xf32, #tpu.memory_space<vmem>>, vector<2x64xf32>
    %c0_24 = arith.constant 0 : index
    %c0_25 = arith.constant 0 : index
    %79 = vector.load %arg6[%c0_24, %c0_25] : memref<4x128xf32, #tpu.memory_space<vmem>>, vector<4x128xf32>
    %80 = arith.subf %77, %78 : vector<2x64xf32>
    %81 = arith.mulf %80, %80 : vector<2x64xf32>
    %82 = vector.shape_cast %81 : vector<2x64xf32> to vector<1x2x64xf32>
    %cst_26 = arith.constant dense<0.000000e+00> : vector<1xf32>
    %83 = vector.multi_reduction <add>, %82, %cst_26 [1, 2] : vector<1x2x64xf32> to vector<1xf32>
    %84 = vector.shape_cast %83 : vector<1xf32> to vector<1x1x1xf32>
    %85 = vector.extract %84[0, 0, 0] : f32 from vector<1x1x1xf32>
    %86 = tpu.iota {dimensions = array<i32: 1>} : vector<4x128xi32>
    %c127_i32 = arith.constant 127 : i32
    %87 = tpu.dynamic_rotate %79 by %c127_i32 dim 1 : vector<4x128xf32>, i32 -> vector<4x128xf32>
    %88 = arith.subf %87, %79 : vector<4x128xf32>
    %c8_i32 = arith.constant 8 : i32
    %c0_i32_27 = arith.constant 0 : i32
    %89 = arith.cmpi eq, %c8_i32, %c0_i32_27 : i32
    %c1_i32_28 = arith.constant 1 : i32
    %90 = arith.select %89, %c1_i32_28, %c8_i32 : i32
    %91 = vector.broadcast %90 : i32 to vector<4x128xi32>
    %92 = arith.remsi %86, %91 : vector<4x128xi32>
    %c0_i32_29 = arith.constant 0 : i32
    %93 = vector.broadcast %c0_i32_29 : i32 to vector<4x128xi32>
    %94 = arith.cmpi ne, %92, %93 : vector<4x128xi32>
    %c0_i32_30 = arith.constant 0 : i32
    %95 = vector.broadcast %c0_i32_30 : i32 to vector<4x128xi32>
    %96 = arith.cmpi slt, %92, %95 : vector<4x128xi32>
    %c0_i32_31 = arith.constant 0 : i32
    %97 = arith.cmpi slt, %90, %c0_i32_31 : i32
    %98 = vector.broadcast %97 : i1 to vector<4x128xi1>
    %99 = vector.broadcast %98 : vector<4x128xi1> to vector<4x128xi1>
    %100 = arith.xori %96, %99 : vector<4x128xi1>
    %101 = arith.andi %100, %94 : vector<4x128xi1>
    %102 = vector.broadcast %90 : i32 to vector<4x128xi32>
    %103 = arith.addi %92, %102 : vector<4x128xi32>
    %104 = arith.select %101, %103, %92 : vector<4x128xi1>, vector<4x128xi32>
    %c7_i32 = arith.constant 7 : i32
    %105 = vector.broadcast %c7_i32 : i32 to vector<4x128xi32>
    %106 = arith.cmpi ne, %104, %105 : vector<4x128xi32>
    %c64_i32 = arith.constant 64 : i32
    %107 = vector.broadcast %c64_i32 : i32 to vector<4x128xi32>
    %108 = arith.cmpi slt, %86, %107 : vector<4x128xi32>
    %109 = arith.andi %106, %108 : vector<4x128xi1>
    %cst_32 = arith.constant 0.000000e+00 : f32
    %110 = vector.broadcast %cst_32 : f32 to vector<4x128xf32>
    %111 = arith.select %109, %88, %110 : vector<4x128xi1>, vector<4x128xf32>
    %112 = arith.mulf %111, %111 : vector<4x128xf32>
    %113 = vector.shape_cast %112 : vector<4x128xf32> to vector<1x4x128xf32>
    %cst_33 = arith.constant dense<0.000000e+00> : vector<1xf32>
    %114 = vector.multi_reduction <add>, %113, %cst_33 [1, 2] : vector<1x4x128xf32> to vector<1xf32>
    %115 = vector.shape_cast %114 : vector<1xf32> to vector<1x1x1xf32>
    %116 = vector.extract %115[0, 0, 0] : f32 from vector<1x1x1xf32>
    %c120_i32 = arith.constant 120 : i32
    %117 = tpu.dynamic_rotate %79 by %c120_i32 dim 1 : vector<4x128xf32>, i32 -> vector<4x128xf32>
    %118 = arith.subf %117, %79 : vector<4x128xf32>
    %c56_i32 = arith.constant 56 : i32
    %119 = vector.broadcast %c56_i32 : i32 to vector<4x128xi32>
    %120 = arith.cmpi slt, %86, %119 : vector<4x128xi32>
    %cst_34 = arith.constant 0.000000e+00 : f32
    %121 = vector.broadcast %cst_34 : f32 to vector<4x128xf32>
    %122 = arith.select %120, %118, %121 : vector<4x128xi1>, vector<4x128xf32>
    %123 = arith.mulf %122, %122 : vector<4x128xf32>
    %124 = vector.shape_cast %123 : vector<4x128xf32> to vector<1x4x128xf32>
    %cst_35 = arith.constant dense<0.000000e+00> : vector<1xf32>
    %125 = vector.multi_reduction <add>, %124, %cst_35 [1, 2] : vector<1x4x128xf32> to vector<1xf32>
    %126 = vector.shape_cast %125 : vector<1xf32> to vector<1x1x1xf32>
    %127 = vector.extract %126[0, 0, 0] : f32 from vector<1x1x1xf32>
    %c1_i32_36 = arith.constant 1 : i32
    %128 = vector.broadcast %c1_i32_36 : i32 to vector<8x128xi32>
    %129 = arith.cmpi eq, %0, %128 : vector<8x128xi32>
    %c0_i32_37 = arith.constant 0 : i32
    %130 = vector.broadcast %c0_i32_37 : i32 to vector<8x128xi32>
    %131 = arith.cmpi eq, %1, %130 : vector<8x128xi32>
    %132 = arith.andi %129, %131 : vector<8x128xi1>
    %cst_38 = arith.constant 0.000000e+00 : f32
    %133 = vector.broadcast %85 : f32 to vector<8x128xf32>
    %134 = vector.broadcast %cst_38 : f32 to vector<8x128xf32>
    %135 = arith.select %132, %133, %134 : vector<8x128xi1>, vector<8x128xf32>
    %136 = arith.addf %76, %135 : vector<8x128xf32>
    %c1_i32_39 = arith.constant 1 : i32
    %137 = vector.broadcast %c1_i32_39 : i32 to vector<8x128xi32>
    %138 = arith.cmpi eq, %1, %137 : vector<8x128xi32>
    %139 = arith.andi %129, %138 : vector<8x128xi1>
    %cst_40 = arith.constant 0.000000e+00 : f32
    %140 = vector.broadcast %116 : f32 to vector<8x128xf32>
    %141 = vector.broadcast %cst_40 : f32 to vector<8x128xf32>
    %142 = arith.select %139, %140, %141 : vector<8x128xi1>, vector<8x128xf32>
    %143 = arith.addf %136, %142 : vector<8x128xf32>
    %c2_i32_41 = arith.constant 2 : i32
    %144 = vector.broadcast %c2_i32_41 : i32 to vector<8x128xi32>
    %145 = arith.cmpi eq, %1, %144 : vector<8x128xi32>
    %146 = arith.andi %129, %145 : vector<8x128xi1>
    %cst_42 = arith.constant 0.000000e+00 : f32
    %147 = vector.broadcast %127 : f32 to vector<8x128xf32>
    %148 = vector.broadcast %cst_42 : f32 to vector<8x128xf32>
    %149 = arith.select %146, %147, %148 : vector<8x128xi1>, vector<8x128xf32>
    %150 = arith.addf %143, %149 : vector<8x128xf32>
    %c0_43 = arith.constant 0 : index
    %c0_44 = arith.constant 0 : index
    %151 = vector.load %arg7[%c0_43, %c0_44] : memref<2x16xf32, #tpu.memory_space<vmem>>, vector<2x16xf32>
    %c0_45 = arith.constant 0 : index
    %c0_46 = arith.constant 0 : index
    %152 = vector.load %arg8[%c0_45, %c0_46] : memref<2x16xf32, #tpu.memory_space<vmem>>, vector<2x16xf32>
    %c0_47 = arith.constant 0 : index
    %c0_48 = arith.constant 0 : index
    %153 = vector.load %arg9[%c0_47, %c0_48] : memref<4x128xf32, #tpu.memory_space<vmem>>, vector<4x128xf32>
    %154 = arith.subf %151, %152 : vector<2x16xf32>
    %155 = arith.mulf %154, %154 : vector<2x16xf32>
    %156 = vector.shape_cast %155 : vector<2x16xf32> to vector<1x2x16xf32>
    %cst_49 = arith.constant dense<0.000000e+00> : vector<1xf32>
    %157 = vector.multi_reduction <add>, %156, %cst_49 [1, 2] : vector<1x2x16xf32> to vector<1xf32>
    %158 = vector.shape_cast %157 : vector<1xf32> to vector<1x1x1xf32>
    %159 = vector.extract %158[0, 0, 0] : f32 from vector<1x1x1xf32>
    %160 = tpu.iota {dimensions = array<i32: 1>} : vector<4x128xi32>
    %c127_i32_50 = arith.constant 127 : i32
    %161 = tpu.dynamic_rotate %153 by %c127_i32_50 dim 1 : vector<4x128xf32>, i32 -> vector<4x128xf32>
    %162 = arith.subf %161, %153 : vector<4x128xf32>
    %c4_i32 = arith.constant 4 : i32
    %c0_i32_51 = arith.constant 0 : i32
    %163 = arith.cmpi eq, %c4_i32, %c0_i32_51 : i32
    %c1_i32_52 = arith.constant 1 : i32
    %164 = arith.select %163, %c1_i32_52, %c4_i32 : i32
    %165 = vector.broadcast %164 : i32 to vector<4x128xi32>
    %166 = arith.remsi %160, %165 : vector<4x128xi32>
    %c0_i32_53 = arith.constant 0 : i32
    %167 = vector.broadcast %c0_i32_53 : i32 to vector<4x128xi32>
    %168 = arith.cmpi ne, %166, %167 : vector<4x128xi32>
    %c0_i32_54 = arith.constant 0 : i32
    %169 = vector.broadcast %c0_i32_54 : i32 to vector<4x128xi32>
    %170 = arith.cmpi slt, %166, %169 : vector<4x128xi32>
    %c0_i32_55 = arith.constant 0 : i32
    %171 = arith.cmpi slt, %164, %c0_i32_55 : i32
    %172 = vector.broadcast %171 : i1 to vector<4x128xi1>
    %173 = vector.broadcast %172 : vector<4x128xi1> to vector<4x128xi1>
    %174 = arith.xori %170, %173 : vector<4x128xi1>
    %175 = arith.andi %174, %168 : vector<4x128xi1>
    %176 = vector.broadcast %164 : i32 to vector<4x128xi32>
    %177 = arith.addi %166, %176 : vector<4x128xi32>
    %178 = arith.select %175, %177, %166 : vector<4x128xi1>, vector<4x128xi32>
    %c3_i32 = arith.constant 3 : i32
    %179 = vector.broadcast %c3_i32 : i32 to vector<4x128xi32>
    %180 = arith.cmpi ne, %178, %179 : vector<4x128xi32>
    %c16_i32_56 = arith.constant 16 : i32
    %181 = vector.broadcast %c16_i32_56 : i32 to vector<4x128xi32>
    %182 = arith.cmpi slt, %160, %181 : vector<4x128xi32>
    %183 = arith.andi %180, %182 : vector<4x128xi1>
    %cst_57 = arith.constant 0.000000e+00 : f32
    %184 = vector.broadcast %cst_57 : f32 to vector<4x128xf32>
    %185 = arith.select %183, %162, %184 : vector<4x128xi1>, vector<4x128xf32>
    %186 = arith.mulf %185, %185 : vector<4x128xf32>
    %187 = vector.shape_cast %186 : vector<4x128xf32> to vector<1x4x128xf32>
    %cst_58 = arith.constant dense<0.000000e+00> : vector<1xf32>
    %188 = vector.multi_reduction <add>, %187, %cst_58 [1, 2] : vector<1x4x128xf32> to vector<1xf32>
    %189 = vector.shape_cast %188 : vector<1xf32> to vector<1x1x1xf32>
    %190 = vector.extract %189[0, 0, 0] : f32 from vector<1x1x1xf32>
    %c124_i32 = arith.constant 124 : i32
    %191 = tpu.dynamic_rotate %153 by %c124_i32 dim 1 : vector<4x128xf32>, i32 -> vector<4x128xf32>
    %192 = arith.subf %191, %153 : vector<4x128xf32>
    %c12_i32 = arith.constant 12 : i32
    %193 = vector.broadcast %c12_i32 : i32 to vector<4x128xi32>
    %194 = arith.cmpi slt, %160, %193 : vector<4x128xi32>
    %cst_59 = arith.constant 0.000000e+00 : f32
    %195 = vector.broadcast %cst_59 : f32 to vector<4x128xf32>
    %196 = arith.select %194, %192, %195 : vector<4x128xi1>, vector<4x128xf32>
    %197 = arith.mulf %196, %196 : vector<4x128xf32>
    %198 = vector.shape_cast %197 : vector<4x128xf32> to vector<1x4x128xf32>
    %cst_60 = arith.constant dense<0.000000e+00> : vector<1xf32>
    %199 = vector.multi_reduction <add>, %198, %cst_60 [1, 2] : vector<1x4x128xf32> to vector<1xf32>
    %200 = vector.shape_cast %199 : vector<1xf32> to vector<1x1x1xf32>
    %201 = vector.extract %200[0, 0, 0] : f32 from vector<1x1x1xf32>
    %c2_i32_61 = arith.constant 2 : i32
    %202 = vector.broadcast %c2_i32_61 : i32 to vector<8x128xi32>
    %203 = arith.cmpi eq, %0, %202 : vector<8x128xi32>
    %c0_i32_62 = arith.constant 0 : i32
    %204 = vector.broadcast %c0_i32_62 : i32 to vector<8x128xi32>
    %205 = arith.cmpi eq, %1, %204 : vector<8x128xi32>
    %206 = arith.andi %203, %205 : vector<8x128xi1>
    %cst_63 = arith.constant 0.000000e+00 : f32
    %207 = vector.broadcast %159 : f32 to vector<8x128xf32>
    %208 = vector.broadcast %cst_63 : f32 to vector<8x128xf32>
    %209 = arith.select %206, %207, %208 : vector<8x128xi1>, vector<8x128xf32>
    %210 = arith.addf %150, %209 : vector<8x128xf32>
    %c1_i32_64 = arith.constant 1 : i32
    %211 = vector.broadcast %c1_i32_64 : i32 to vector<8x128xi32>
    %212 = arith.cmpi eq, %1, %211 : vector<8x128xi32>
    %213 = arith.andi %203, %212 : vector<8x128xi1>
    %cst_65 = arith.constant 0.000000e+00 : f32
    %214 = vector.broadcast %190 : f32 to vector<8x128xf32>
    %215 = vector.broadcast %cst_65 : f32 to vector<8x128xf32>
    %216 = arith.select %213, %214, %215 : vector<8x128xi1>, vector<8x128xf32>
    %217 = arith.addf %210, %216 : vector<8x128xf32>
    %c2_i32_66 = arith.constant 2 : i32
    %218 = vector.broadcast %c2_i32_66 : i32 to vector<8x128xi32>
    %219 = arith.cmpi eq, %1, %218 : vector<8x128xi32>
    %220 = arith.andi %203, %219 : vector<8x128xi1>
    %cst_67 = arith.constant 0.000000e+00 : f32
    %221 = vector.broadcast %201 : f32 to vector<8x128xf32>
    %222 = vector.broadcast %cst_67 : f32 to vector<8x128xf32>
    %223 = arith.select %220, %221, %222 : vector<8x128xi1>, vector<8x128xf32>
    %224 = arith.addf %217, %223 : vector<8x128xf32>
    %c0_68 = arith.constant 0 : index
    %c0_69 = arith.constant 0 : index
    %225 = vector.load %arg10[%c0_68, %c0_69] : memref<8x128xf32, #tpu.memory_space<vmem>>, vector<8x128xf32>
    tpu.vector_store %arg10[%c0_68, %c0_69], %224 {strides = array<i32>} : memref<8x128xf32, #tpu.memory_space<vmem>>, vector<8x128xf32>,
    return
  }
  func.func @transform_0(%arg0: i32) -> (i32, i32) {
    %c0_i32 = arith.constant 0 : i32
    %c0_i32_0 = arith.constant 0 : i32
    %c0_i32_1 = arith.constant 0 : i32
    return %c0_i32, %c0_i32_0 : i32, i32
  }
  func.func @transform_1(%arg0: i32) -> (i32, i32) {
    %c0_i32 = arith.constant 0 : i32
    %c0_i32_0 = arith.constant 0 : i32
    %c0_i32_1 = arith.constant 0 : i32
    return %c0_i32, %c0_i32_0 : i32, i32
  }
  func.func @transform_2(%arg0: i32) -> (i32, i32) {
    %c0_i32 = arith.constant 0 : i32
    %c0_i32_0 = arith.constant 0 : i32
    %c0_i32_1 = arith.constant 0 : i32
    return %c0_i32, %c0_i32_0 : i32, i32
  }
  func.func @transform_3(%arg0: i32) -> (i32, i32) {
    %c0_i32 = arith.constant 0 : i32
    %c0_i32_0 = arith.constant 0 : i32
    %c0_i32_1 = arith.constant 0 : i32
    return %c0_i32, %c0_i32_0 : i32, i32
  }
  func.func @transform_4(%arg0: i32) -> (i32, i32) {
    %c0_i32 = arith.constant 0 : i32
    %c0_i32_0 = arith.constant 0 : i32
    %c0_i32_1 = arith.constant 0 : i32
    return %c0_i32, %c0_i32_0 : i32, i32
  }
  func.func @transform_5(%arg0: i32) -> (i32, i32) {
    %c0_i32 = arith.constant 0 : i32
    %c0_i32_0 = arith.constant 0 : i32
    %c0_i32_1 = arith.constant 0 : i32
    return %c0_i32, %c0_i32_0 : i32, i32
  }
  func.func @transform_6(%arg0: i32) -> (i32, i32) {
    %c0_i32 = arith.constant 0 : i32
    %c0_i32_0 = arith.constant 0 : i32
    %c0_i32_1 = arith.constant 0 : i32
    return %c0_i32, %c0_i32_0 : i32, i32
  }
  func.func @transform_7(%arg0: i32) -> (i32, i32) {
    %c0_i32 = arith.constant 0 : i32
    %c0_i32_0 = arith.constant 0 : i32
    %c0_i32_1 = arith.constant 0 : i32
    return %c0_i32, %c0_i32_0 : i32, i32
  }
  func.func @transform_8(%arg0: i32) -> (i32, i32) {
    %c0_i32 = arith.constant 0 : i32
    %c0_i32_0 = arith.constant 0 : i32
    %c0_i32_1 = arith.constant 0 : i32
    return %c0_i32, %c0_i32_0 : i32, i32
  }
  func.func @transform_9(%arg0: i32) -> (i32, i32) {
    %c0_i32 = arith.constant 0 : i32
    %c0_i32_0 = arith.constant 0 : i32
    %c0_i32_1 = arith.constant 0 : i32
    return %c0_i32, %c0_i32_0 : i32, i32
  }
}

</mosaic_0001>

<bundles_post_ra>
// kernel: tpu_custom_call.1
= control target key start
LH: loop header
LB: loop body
LE: loop exit
PB: predicated region body
PF: predicated region fallthrough
CT: control target
= control target key end

     0   :  { %14 = vsyncpa [#allocation3], 0  ;;  %s757_s0 = inlined_call_operand.hbm [shape: f32[2,256], index: 0, kind: input, shape index: {}]   ;;  %s758_s1 = inlined_call_operand.hbm [shape: f32[2,256], index: 1, kind: input, shape index: {}]   ;;  %s759_s2 = inlined_call_operand.hbm [shape: f32[4,256], index: 2, kind: input, shape index: {}]   ;;  %s760_s3 = inlined_call_operand.hbm [shape: f32[2,64], index: 3, kind: input, shape index: {}]   ;;  %s761_s4 = inlined_call_operand.hbm [shape: f32[2,64], index: 4, kind: input, shape index: {}]   ;;  %s762_s5 = inlined_call_operand.vmem [shape: f32[4,128], index: 5, kind: input, shape index: {}]   ;;  %s763_s6 = inlined_call_operand.vmem [shape: f32[2,16], index: 6, kind: input, shape index: {}]   ;;  %s764_s7 = inlined_call_operand.vmem [shape: f32[2,16], index: 7, kind: input, shape index: {}]   ;;  %s765_s8 = inlined_call_operand.vmem [shape: f32[4,128], index: 8, kind: input, shape index: {}]   ;;  %s766_s9 = inlined_call_operand.hbm [shape: f32[8,128], index: 9, kind: output, shape index: {}]  }
   0x1   :  { %15 = vsyncpa [#allocation6], 0 }
   0x2   :  { %16 = vsyncpa [#allocation9], 0 }
   0x3   :  { %17 = vsyncpa [#allocation4], 0  ;;  %s553_s30 = smov [#allocation5]   ;;  %s554_s11 = smov [#allocation8]  }
   0x4   :  { %s34_s10 = sshll.u32 %s553_s30, 4  ;;  %s54_s12 = sshll.u32 %s554_s11, 4  ;;  %s35_s10 = int_to_ptr.vmem [resolvable:$true] %s34_s10  ;;  %s55_s12 = int_to_ptr.vmem [resolvable:$true] %s54_s12 }
   0x5   :  { %s433_s13 = scalar_lea.vmem %s35_s10, 64  ;;  %p438_p1 = scmp.lt.s32.totalorder %s35_s10, %s35_s10 }
   0x6   :  { %p434_p0 = scmp.ne.s32.totalorder %s35_s10, %s433_s13  ;;  %p439_p2 = scmp.lt.s32.totalorder %s433_s13, %s433_s13 }
   0x8   :  { %p440_p3 = por %p439_p2, %p438_p1 }
   0xa   :  { %p441_p4 = pnand %p440_p3, %p434_p0 }
   0xc   :  { %444 = shalt.err (!%p441_p4)
}
   0xd   :  { %37 = dma.hbm_to_vmem [thread:$0]  %s758_s1, 64, %s35_s10, [#allocation6]  }
   0xe   :  { %s453_s16 = scalar_lea.vmem %s55_s12, 32  ;;  %p458_p6 = scmp.lt.s32.totalorder %s55_s12, %s55_s12 }
   0xf   :  { %p454_p5 = scmp.ne.s32.totalorder %s55_s12, %s453_s16  ;;  %p459_p7 = scmp.lt.s32.totalorder %s453_s16, %s453_s16 }
  0x11   :  { %p460_p8 = por %p459_p7, %p458_p6 }
  0x13   :  { %p461_p9 = pnand %p460_p8, %p454_p5 }
  0x15   :  { %464 = shalt.err (!%p461_p9)
}
  0x16   :  { %57 = dma.hbm_to_vmem [thread:$0]  %s760_s3, 32, %s55_s12, [#allocation9]  }
  0x17   :  { %s555_s19 = smov [#allocation2]   ;;  %s556_s21 = smov [#allocation7]  }
  0x18   :  { %s24_s20 = sshll.u32 %s555_s19, 4  ;;  %s44_s22 = sshll.u32 %s556_s21, 4  ;;  %s25_s20 = int_to_ptr.vmem [resolvable:$true] %s24_s20  ;;  %s45_s22 = int_to_ptr.vmem [resolvable:$true] %s44_s22 }
  0x19   :  { %s473_s23 = scalar_lea.vmem %s25_s20, 64  ;;  %p478_p11 = scmp.lt.s32.totalorder %s25_s20, %s25_s20 }
  0x1a   :  { %p474_p10 = scmp.ne.s32.totalorder %s25_s20, %s473_s23  ;;  %p479_p12 = scmp.lt.s32.totalorder %s473_s23, %s473_s23 }
  0x1c   :  { %p480_p13 = por %p479_p12, %p478_p11 }
  0x1e   :  { %p481_p0 = pnand %p480_p13, %p474_p10 }
  0x20   :  { %484 = shalt.err (!%p481_p0)
}
  0x21   :  { %27 = dma.hbm_to_vmem [thread:$0]  %s757_s0, 64, %s25_s20, [#allocation3]  }
  0x22   :  { %s493_s25 = scalar_lea.vmem %s45_s22, 128  ;;  %p498_p2 = scmp.lt.s32.totalorder %s45_s22, %s45_s22 }
  0x23   :  { %p494_p1 = scmp.ne.s32.totalorder %s45_s22, %s493_s25  ;;  %p499_p3 = scmp.lt.s32.totalorder %s493_s25, %s493_s25 }
  0x25   :  { %p500_p4 = por %p499_p3, %p498_p2 }
  0x27   :  { %p501_p5 = pnand %p500_p4, %p494_p1 }
  0x29   :  { %504 = shalt.err (!%p501_p5)
}
  0x2a   :  { %47 = dma.hbm_to_vmem [thread:$0]  %s759_s2, 128, %s45_s22, [#allocation6]  }
  0x2b   :  { %s557_s27 = smov [#allocation10]  }
  0x2c   :  { %s64_s28 = sshll.u32 %s557_s27, 4  ;;  %s65_s28 = int_to_ptr.vmem [resolvable:$true] %s64_s28 }
  0x2d   :  { %s513_s29 = scalar_lea.vmem %s65_s28, 32  ;;  %p518_p7 = scmp.lt.s32.totalorder %s65_s28, %s65_s28 }
  0x2e   :  { %p514_p6 = scmp.ne.s32.totalorder %s65_s28, %s513_s29  ;;  %p519_p8 = scmp.lt.s32.totalorder %s513_s29, %s513_s29 }
  0x30   :  { %p520_p9 = por %p519_p8, %p518_p7 }
  0x32   :  { %p521_p10 = pnand %p520_p9, %p514_p6 }
  0x34   :  { %524 = shalt.err (!%p521_p10)
}
  0x35   :  { %67 = dma.hbm_to_vmem [thread:$0]  %s761_s4, 32, %s65_s28, [#allocation9]  }
  0x36   :  { %545 = dma.done.wait [#allocation3], 64  }
  0x37   :  { %546 = vsyncadd [#allocation3], 4294967232 }
  0x38   :  { %547 = dma.done.wait [#allocation6], 192  }
  0x39   :  { %548 = vsyncadd [#allocation6], 4294967104 }
  0x3a   :  { %549 = dma.done.wait [#allocation9], 64  }
  0x3b   :  { %550 = vsyncadd [#allocation9], 4294967232  ;;  %v629_v0 = vld [vmem:[#allocation7] sm:$0xff]  ;;  %s558_s2 = smov 112   ;;  %s559_s10 = smov 127   ;;  %v91_v4 = vlaneseq  ;;  %vm111_vm0 = vcmask 1041408  }
  0x3c   :  { %184 = vrot.lane.b32.xlu1 %v629_v0, %s558_s2  ;;  %128 = vrot.lane.b32.xlu0 %v629_v0, %s559_s10  ;;  %v635_v1 = vcombine.high %v629_v0, %v629_v0  ;;  %v642_v2 = vld [vmem:[%s762_s5] sm:$0xf]  ;;  %s560_s12 = smov 120   ;;  %s561_s15 = smov 124   ;;  %v562_v5 = vmov 1983009808  }
  0x3d   :  { %v649_v3 = vld [vmem:[%s765_s8] sm:$0xf]  ;;  %v102_v6 = vunpack.c.l.s4 %v562_v5  ;;  %v96_v8 = vld [vmem:[#allocation5] sm:$0xf]  ;;  %v653_v9 = vshrl.u32 %v91_v4, 7  ;;  %v656_v19 = vand.u32 127, %v91_v4 }
  0x3e   :  { %v95_v7 = vld [vmem:[#allocation2] sm:$0xf]  ;;  %v227_v26 = vld [vmem:[#allocation8] sm:$0x3]  ;;  %v228_v27 = vld [vmem:[#allocation10] sm:$0x3] }
  0x3f   :  { %v98_v10 = vsub.f32 %v95_v7, %v96_v8  ;;  %v103_v11 = vunpack.c.0.s8 %v102_v6  ;;  %v124_v20 = vadd.s32 128, %v656_v19  ;;  %v250_v21 = vand.u32 7, %v656_v19  ;;  %v302_v35 = vld [vmem:[%s763_s6] sm:$0x3]  ;;  %s563_s24 = smov [#allocation11]  }
  0x40   :  { %186 = vrot.lane.b32.xlu1 %v635_v1, %s558_s2  ;;  %130 = vrot.lane.b32.xlu0 %v635_v1, %s559_s10  ;;  %v141_v22 = vand.u32 15, %v656_v19  ;;  %vm188_vm1 = vcmp.lt.s32.totalorder %v656_v19, 112  ;;  %vm132_vm2 = vcmp.lt.s32.totalorder %v656_v19, 127  ;;  %vm259_vm3 = vcmp.lt.s32.totalorder %v656_v19, 64  ;;  %v303_v36 = vld [vmem:[%s764_s7] sm:$0x3] }
  0x41   :  { %v99_v12 = vmul.f32 %v98_v10, %v98_v10  ;;  %v106_v13 = vsub.s32 %v103_v11, %v653_v9  ;;  %v148_v25 = vand.u32 15, %v124_v20  ;;  %vm171_vm4 = vcmask 1043456   ;;  %s384_s25 = sshll.u32 %s563_s24, 4  ;;  %s385_s25 = int_to_ptr.vmem [resolvable:$true] %s384_s25 }
  0x42   :  { %vm664_vm5 = vcmp.ne.s32.totalorder %v250_v21, 7  ;;  %vm668_vm6 = vcmp.ne.s32.totalorder %v141_v22, 15  ;;  %vm194_vm7 = vcmp.lt.s32.totalorder %v124_v20, 240  ;;  %v230_v30 = vsub.f32 %v227_v26, %v228_v27  ;;  %s525_s3 = scalar_lea.vmem %s385_s25, 128  ;;  %p530_p12 = scmp.lt.s32.totalorder %s385_s25, %s385_s25 }
  0x43   :  { %v107_v14 = vrot.slane %v99_v12, %v106_v13  ;;  %vm672_vm8 = vcmp.ne.s32.totalorder %v148_v25, 15  ;;  %v325_v34 = vand.u32 3, %v656_v19  ;;  %vm276_vm9 = vcmp.lt.s32.totalorder %v656_v19, 56  ;;  %vm260_vm11 = vmand %vm664_vm5, %vm259_vm3  ;;  %p526_p11 = scmp.ne.s32.totalorder %s385_s25, %s525_s3  ;;  %p531_p13 = scmp.lt.s32.totalorder %s525_s3, %s525_s3 }
  0x44   :  { %243 = vrot.lane.b32.xlu0 %v642_v2, %s559_s10  ;;  %273 = vrot.lane.b32.xlu1 %v642_v2, %s560_s12  ;;  %v231_v45 = vmul.f32 %v230_v30, %v230_v30  ;;  %vm232_vm10 = vcmask 517120   ;;  %v305_v46 = vsub.f32 %v302_v35, %v303_v36  ;;  %vm334_vm13 = vcmp.lt.s32.totalorder %v656_v19, 16 }
  0x45   :  { %v108_v15 = vcombine.high %v107_v14, %v107_v14  ;;  %v112_v16 = vsel %vm111_vm0, %v107_v14, 0.0  ;;  %vm333_vm12 = vcmp.ne.s32.totalorder %v325_v34, 3  ;;  %vm351_vm14 = vcmp.lt.s32.totalorder %v656_v19, 12  ;;  %p532_p0 = por %p531_p13, %p530_p12 }
  0x46   :  { %vm335_vm15 = vmand %vm333_vm12, %vm334_vm13  ;;  %v233_v10 = vsel %vm232_vm10, %v231_v45, 0.0  ;;  %v306_v11 = vmul.f32 %v305_v46, %v305_v46  ;;  %vm217_vm3 = vcmp.eq.s32.totalorder %v656_v19, 1  ;;  %vm222_vm5 = vcmp.eq.s32.totalorder %v656_v19, 2 }
  0x47   :  { %v113_v17 = vsel %vm111_vm0, %v108_v15, 0.0  ;;  %vm307_vm0 = vcmask 123904   ;;  %vm364_vm12 = vcmp.eq.s32.totalorder %v653_v9, 2  ;;  %p533_p1 = pnand %p532_p0, %p526_p11 }
  0x48   :  { %348 = vrot.lane.b32.xlu1 %v649_v3, %s561_s15  ;;  %318 = vrot.lane.b32.xlu0 %v649_v3, %s559_s10  ;;  %v114_v18 = vadd.f32 %v113_v17, %v112_v16  ;;  %v308_v15 = vsel %vm307_vm0, %v306_v11, 0.0 }
  0x67   :  { %115 = vadd.xlane.f32.xlu0 %v114_v18 }
  0xae   :  { %v185_v23 = vpop.permute.xlu1 %184  ;;  %v129_v24 = vpop.permute.xlu0 %128 }
  0xb2   :  { %v187_v31 = vpop.permute.xlu1 %186  ;;  %v131_v32 = vpop.permute.xlu0 %130 }
  0xb3   :  { %v189_v37 = vsel %vm188_vm1, %v185_v23, %v187_v31  ;;  %v190_v38 = vsel %vm188_vm1, %v187_v31, %v185_v23  ;;  %v133_v39 = vsel %vm132_vm2, %v129_v24, %v131_v32  ;;  %v134_v40 = vsel %vm132_vm2, %v131_v32, %v129_v24 }
  0xb4   :  { %v191_v41 = vsub.f32 %v189_v37, %v629_v0  ;;  %v192_v42 = vsub.f32 %v190_v38, %v635_v1  ;;  %v135_v43 = vsub.f32 %v133_v39, %v629_v0  ;;  %v136_v44 = vsub.f32 %v134_v40, %v635_v1 }
  0xb5   :  { %vm211_vm1 = vcmp.eq.s32.totalorder %v653_v9, 0  ;;  %vm212_vm2 = vcmp.eq.s32.totalorder %v656_v19, 0 }
  0xb6   :  { %v197_v47 = vmul.f32 %v191_v41, %v191_v41  ;;  %v244_v48 = vpop.permute.xlu0 %243  ;;  %v167_v49 = vsel %vm668_vm6, %v135_v43, 0.0  ;;  %v168_v50 = vsel %vm672_vm8, %v136_v44, 0.0  ;;  %v196_v51 = vsel %vm194_vm7, %v192_v42, 0.0  ;;  %v274_v52 = vpop.permute.xlu1 %273  ;;  %vm218_vm6 = vmand %vm211_vm1, %vm217_vm3 }
  0xb7   :  { %v245_v53 = vsub.f32 %v244_v48, %v642_v2  ;;  %v169_v54 = vmul.f32 %v167_v49, %v167_v49  ;;  %v170_v55 = vmul.f32 %v168_v50, %v168_v50  ;;  %v198_v56 = vmul.f32 %v196_v51, %v196_v51  ;;  %vm223_vm8 = vmand %vm211_vm1, %vm222_vm5 }
  0xb8   :  { %v199_v57 = vsel %vm171_vm4, %v197_v47, 0.0  ;;  %v275_v58 = vsub.f32 %v274_v52, %v642_v2  ;;  %vm289_vm7 = vcmp.eq.s32.totalorder %v653_v9, 1  ;;  %vm365_vm13 = vmand %vm364_vm12, %vm212_vm2 }
  0xb9   :  { %v261_v59 = vsel %vm260_vm11, %v245_v53, 0.0  ;;  %v172_v60 = vsel %vm171_vm4, %v169_v54, 0.0  ;;  %v173_v61 = vsel %vm171_vm4, %v170_v55, 0.0  ;;  %v200_v62 = vsel %vm171_vm4, %v198_v56, 0.0  ;;  %vm294_vm10 = vmand %vm289_vm7, %vm217_vm3 }
  0xba   :  { %v174_v63 = vadd.f32 %v173_v61, %v172_v60  ;;  %v201_v0 = vadd.f32 %v200_v62, %v199_v57  ;;  %v277_v1 = vsel %vm276_vm9, %v275_v58, 0.0  ;;  %v262_v4 = vmul.f32 %v261_v59, %v261_v59  ;;  %v349_v5 = vpop.permute.xlu1 %348  ;;  %v319_v6 = vpop.permute.xlu0 %318  ;;  %vm290_vm9 = vmand %vm289_vm7, %vm212_vm2 }
  0xbb   :  { %v350_v2 = vsub.f32 %v349_v5, %v649_v3  ;;  %v320_v7 = vsub.f32 %v319_v6, %v649_v3  ;;  %v278_v12 = vmul.f32 %v277_v1, %v277_v1  ;;  %vm298_vm11 = vmand %vm289_vm7, %vm222_vm5 }
  0xbc   :  { %175 = vadd.xlane.f32.xlu1 %v174_v63  ;;  %202 = vadd.xlane.f32.xlu0 %v201_v0  ;;  %v263_v8 = vsel %vm171_vm4, %v262_v4, 0.0 }
  0xbd   :  { %v352_v13 = vsel %vm351_vm14, %v350_v2, 0.0  ;;  %v336_v14 = vsel %vm335_vm15, %v320_v7, 0.0  ;;  %v279_v16 = vsel %vm171_vm4, %v278_v12, 0.0  ;;  %vm369_vm14 = vmand %vm364_vm12, %vm217_vm3 }
  0xbe   :  { %v353_v17 = vmul.f32 %v352_v13, %v352_v13  ;;  %v337_v18 = vmul.f32 %v336_v14, %v336_v14  ;;  %vm373_vm15 = vmand %vm364_vm12, %vm222_vm5 }
  0xc0   :  { %264 = vadd.xlane.f32.xlu1 %v263_v8  ;;  %234 = vadd.xlane.f32.xlu0 %v233_v10  ;;  %v354_v3 = vsel %vm171_vm4, %v353_v17, 0.0  ;;  %v338_v20 = vsel %vm171_vm4, %v337_v18, 0.0  ;;  %vm213_vm4 = vmand %vm211_vm1, %vm212_vm2 }
  0xc4   :  { %309 = vadd.xlane.f32.xlu1 %v308_v15  ;;  %280 = vadd.xlane.f32.xlu0 %v279_v16 }
  0xc8   :  { %355 = vadd.xlane.f32.xlu1 %v354_v3  ;;  %339 = vadd.xlane.f32.xlu0 %v338_v20 }
  0xf0   :  { %v116_v21 = vpop.xlane.xlu0 %115 }
  0xf1   :  { %v117_v22 = vrot.slane %v116_v21, 4 }
  0xf3   :  { %v118_v23 = vadd.f32 %v117_v22, %v116_v21 }
  0xf5   :  { %v119_v24 = vrot.slane %v118_v23, 2 }
  0xf7   :  { %v120_v25 = vadd.f32 %v119_v24, %v118_v23 }
  0xf9   :  { %v121_v26 = vrot.slane %v120_v25, 1 }
  0xfb   :  { %v122_v27 = vadd.f32 %v121_v26, %v120_v25 }
  0xfd   :  { %395 = vpush %v122_v27 }
 0x12e   :  { %s396_s6 = spop %395 }
 0x12f   :  { %v214_v22 = vstv %s396_s6 }
 0x130   :  { %v215_v24 = vsel %vm213_vm4, %v214_v22, 0.0 }
 0x145   :  { %v176_v28 = vpop.xlane.xlu1 %175  ;;  %v203_v29 = vpop.xlane.xlu0 %202 }
 0x146   :  { %v177_v30 = vrot.slane %v176_v28, 4  ;;  %v204_v31 = vrot.slane %v203_v29, 4 }
 0x148   :  { %v178_v32 = vadd.f32 %v177_v30, %v176_v28  ;;  %v205_v33 = vadd.f32 %v204_v31, %v203_v29 }
 0x149   :  { %v265_v34 = vpop.xlane.xlu1 %264  ;;  %v235_v35 = vpop.xlane.xlu0 %234 }
 0x14a   :  { %v179_v36 = vrot.slane %v178_v32, 2  ;;  %v206_v37 = vrot.slane %v205_v33, 2  ;;  %v266_v38 = vrot.slane %v265_v34, 4  ;;  %v236_v39 = vrot.slane %v235_v35, 4 }
 0x14c   :  { %v267_v40 = vadd.f32 %v266_v38, %v265_v34  ;;  %v237_v41 = vadd.f32 %v236_v39, %v235_v35  ;;  %v180_v42 = vadd.f32 %v179_v36, %v178_v32  ;;  %v207_v43 = vadd.f32 %v206_v37, %v205_v33 }
 0x14d   :  { %v310_v44 = vpop.xlane.xlu1 %309  ;;  %v281_v45 = vpop.xlane.xlu0 %280 }
 0x14e   :  { %v268_v46 = vrot.slane %v267_v40, 2  ;;  %v238_v47 = vrot.slane %v237_v41, 2  ;;  %v311_v48 = vrot.slane %v310_v44, 4  ;;  %v282_v49 = vrot.slane %v281_v45, 4 }
 0x14f   :  { %v181_v50 = vrot.slane %v180_v42, 1  ;;  %v208_v51 = vrot.slane %v207_v43, 1 }
 0x150   :  { %v312_v52 = vadd.f32 %v311_v48, %v310_v44  ;;  %v283_v53 = vadd.f32 %v282_v49, %v281_v45  ;;  %v239_v54 = vadd.f32 %v238_v47, %v237_v41  ;;  %v269_v55 = vadd.f32 %v268_v46, %v267_v40 }
 0x151   :  { %v356_v56 = vpop.xlane.xlu1 %355  ;;  %v340_v57 = vpop.xlane.xlu0 %339  ;;  %v182_v58 = vadd.f32 %v181_v50, %v180_v42  ;;  %v209_v59 = vadd.f32 %v208_v51, %v207_v43 }
 0x152   :  { %v313_v60 = vrot.slane %v312_v52, 2  ;;  %v284_v61 = vrot.slane %v283_v53, 2  ;;  %v357_v62 = vrot.slane %v356_v56, 4  ;;  %v341_v63 = vrot.slane %v340_v57, 4 }
 0x153   :  { %397 = vpush %v182_v58  ;;  %v240_v0 = vrot.slane %v239_v54, 1  ;;  %v270_v1 = vrot.slane %v269_v55, 1 }
 0x154   :  { %v358_v4 = vadd.f32 %v357_v62, %v356_v56  ;;  %v342_v5 = vadd.f32 %v341_v63, %v340_v57  ;;  %399 = vpush %v209_v59  ;;  %v285_v6 = vadd.f32 %v284_v61, %v283_v53  ;;  %v314_v2 = vadd.f32 %v313_v60, %v312_v52 }
 0x155   :  { %v241_v7 = vadd.f32 %v240_v0, %v239_v54  ;;  %v271_v8 = vadd.f32 %v270_v1, %v269_v55 }
 0x156   :  { %v359_v10 = vrot.slane %v358_v4, 2  ;;  %v343_v11 = vrot.slane %v342_v5, 2  ;;  %v286_v12 = vrot.slane %v285_v6, 1  ;;  %v315_v13 = vrot.slane %v314_v2, 1 }
 0x157   :  { %401 = vpush %v241_v7 }
 0x158   :  { %v360_v14 = vadd.f32 %v359_v10, %v358_v4  ;;  %v344_v15 = vadd.f32 %v343_v11, %v342_v5  ;;  %403 = vpush %v271_v8  ;;  %v287_v16 = vadd.f32 %v286_v12, %v285_v6  ;;  %v316_v17 = vadd.f32 %v315_v13, %v314_v2 }
 0x15a   :  { %405 = vpush %v287_v16  ;;  %v345_v18 = vrot.slane %v344_v15, 1  ;;  %v361_v3 = vrot.slane %v360_v14, 1 }
 0x15b   :  { %407 = vpush %v316_v17 }
 0x15c   :  { %v346_v20 = vadd.f32 %v345_v18, %v344_v15  ;;  %v362_v21 = vadd.f32 %v361_v3, %v360_v14 }
 0x15e   :  { %409 = vpush %v346_v20 }
 0x15f   :  { %411 = vpush %v362_v21 }
 0x184   :  { %s398_s7 = spop %397 }
 0x185   :  { %v219_v23 = vstv %s398_s7  ;;  %s400_s18 = spop %399 }
 0x186   :  { %v220_v25 = vsel %vm218_vm6, %v219_v23, 0.0  ;;  %v224_v26 = vstv %s400_s18 }
 0x187   :  { %v221_v27 = vadd.f32 %v220_v25, %v215_v24  ;;  %v225_v28 = vsel %vm223_vm8, %v224_v26, 0.0 }
 0x188   :  { %s402_s19 = spop %401 }
 0x189   :  { %v226_v29 = vadd.f32 %v225_v28, %v221_v27  ;;  %v291_v30 = vstv %s402_s19  ;;  %s404_s20 = spop %403 }
 0x18a   :  { %v292_v31 = vsel %vm290_vm9, %v291_v30, 0.0  ;;  %v295_v32 = vstv %s404_s20 }
 0x18b   :  { %v293_v33 = vadd.f32 %v292_v31, %v226_v29  ;;  %s406_s21 = spop %405  ;;  %v296_v34 = vsel %vm294_vm10, %v295_v32, 0.0 }
 0x18c   :  { %v299_v35 = vstv %s406_s21  ;;  %s408_s22 = spop %407 }
 0x18d   :  { %v297_v36 = vadd.f32 %v296_v34, %v293_v33  ;;  %v300_v37 = vsel %vm298_vm11, %v299_v35, 0.0  ;;  %v366_v38 = vstv %s408_s22 }
 0x18e   :  { %v367_v40 = vsel %vm365_vm13, %v366_v38, 0.0 }
 0x18f   :  { %v301_v39 = vadd.f32 %v300_v37, %v297_v36  ;;  %s410_s23 = spop %409 }
 0x190   :  { %v370_v41 = vstv %s410_s23  ;;  %s412_s1 = spop %411 }
 0x191   :  { %v368_v42 = vadd.f32 %v367_v40, %v301_v39  ;;  %v371_v43 = vsel %vm369_vm14, %v370_v41, 0.0  ;;  %v374_v44 = vstv %s412_s1 }
 0x192   :  { %v375_v46 = vsel %vm373_vm15, %v374_v44, 0.0 }
 0x193   :  { %v372_v45 = vadd.f32 %v371_v43, %v368_v42 }
 0x195   :  { %v376_v47 = vadd.f32 %v375_v46, %v372_v45 }
 0x197   :  { %377 = vst [vmem:[#allocation11] sm:$0xff] %v376_v47 }
 0x198   :  { %536 = shalt.err (!%p533_p1)
}
 0x199   :  { %387 = dma.vmem_to_hbm [thread:$0]  %s385_s25, 128, %s766_s9, [#allocation4]  }
 0x19a   :  { %551 = dma.done.wait [#allocation4], 128  }
 0x19b   :  { %552 = vsyncadd [#allocation4], 4294967168 }
 0x19c   :  { %391 = vsyncpa [#allocation3], 1 }
 0x19d   :  { %392 = vsyncpa [#allocation6], 1 }
 0x19e   :  { %393 = vsyncpa [#allocation9], 1 }
 0x19f   :  { %394 = vsyncpa [#allocation4], 1 }

</bundles_post_ra>
